<compile_context>
chip_gen: v7x
topology: tpu7x:2x2x1
jax: 0.10.0
libtpu: 0.0.40
codegen_flags: <defaults>
</compile_context>

<pallas_src>
import functools

import jax
import jax.numpy as jnp
from jax.experimental import pallas as pl
from jax.experimental.pallas import tpu as pltpu

LANES = 128
SUBLANES = 8
MAX_ROWS = 1024  # (1024, 128) f32 block = 512 KiB per input


def _ssd_partial_kernel(s_ref, t_ref, o_ref, *, rows):
    """Write the (8, 128) per-lane partial sums of (s - t)^2 for this block."""
    acc = jnp.zeros((SUBLANES, LANES), jnp.float32)
    # Static unroll over vreg-sized (8, 128) chunks: keeps live vregs tiny and
    # the per-step path purely on the VPU.
    for g in range(rows // SUBLANES):
        lo = g * SUBLANES
        sv = s_ref[lo:lo + SUBLANES, :].astype(jnp.float32)
        tv = t_ref[lo:lo + SUBLANES, :].astype(jnp.float32)
        d = sv - tv
        acc = acc + d * d
    o_ref[...] = acc


def _round_up(x, m):
    return ((x + m - 1) // m) * m


def feature_distillation_loss(student_features, teacher_features):
    """JAX/Pallas equivalent of FeatureDistillationLoss.forward."""
    assert len(student_features) == len(teacher_features)
    sizes = [int(sf.size) for sf in student_features]

    # Row tile: as large as useful, but capped by the largest feature so a
    # list of tiny feature maps is not blown up to full-size blocks.
    max_rows_needed = max(pl.cdiv(n, LANES) for n in sizes)
    rows = min(MAX_ROWS, _round_up(max_rows_needed, SUBLANES))
    block_elems = rows * LANES

    # Build the fused, block-aligned buffers (single concat copy each) and the
    # per-block 1/n_i weights (MSE 'mean' reduction per feature).
    s_parts, t_parts, scales = [], [], []
    for sf, tf, n in zip(student_features, teacher_features, sizes):
        assert int(tf.size) == n, "student/teacher feature sizes must match"
        pad = (-n) % block_elems
        nblk = (n + pad) // block_elems
        s_flat, t_flat = jnp.ravel(sf), jnp.ravel(tf)
        s_parts.append(s_flat)
        t_parts.append(t_flat)
        if pad:
            s_parts.append(jnp.zeros((pad,), s_flat.dtype))
            t_parts.append(jnp.zeros((pad,), t_flat.dtype))
        scales.extend([1.0 / n] * nblk)

    s_all = jnp.concatenate(s_parts).reshape(-1, LANES)
    t_all = jnp.concatenate(t_parts).reshape(-1, LANES)
    scales = jnp.asarray(scales, jnp.float32)  # (num_blocks,)
    num_blocks = s_all.shape[0] // rows

    partials = pl.pallas_call(
        functools.partial(_ssd_partial_kernel, rows=rows),
        out_shape=jax.ShapeDtypeStruct((num_blocks * SUBLANES, LANES), jnp.float32),
        grid=(num_blocks,),
        in_specs=[
            pl.BlockSpec((rows, LANES), lambda i: (i, 0)),
            pl.BlockSpec((rows, LANES), lambda i: (i, 0)),
        ],
        out_specs=pl.BlockSpec((SUBLANES, LANES), lambda i: (i, 0)),
        compiler_params=pltpu.CompilerParams(
            dimension_semantics=("parallel",),  # no cross-step deps -> megacore OK
        ),
    )(s_all, t_all)

    # Tiny finalization in plain JAX: per-block sums, weighted by 1/n_i.
    per_block = jnp.sum(partials.reshape(num_blocks, SUBLANES * LANES), axis=-1)
    return jnp.dot(per_block, scales)


if __name__ == "__main__":
    key = jax.random.PRNGKey(0)
    k1, k2, k3, k4 = jax.random.split(key, 4)

    # Two feature-map pairs (NCHW), small shapes.
    student_features = [
        jax.random.normal(k1, (2, 4, 16, 16), dtype=jnp.float32),
        jax.random.normal(k2, (2, 8, 8, 8), dtype=jnp.float32),
    ]
    teacher_features = [
        jax.random.normal(k3, (2, 4, 16, 16), dtype=jnp.float32),
        jax.random.normal(k4, (2, 8, 8, 8), dtype=jnp.float32),
    ]

    loss = feature_distillation_loss(student_features, teacher_features)
    loss = jax.block_until_ready(loss)

    # Pure-JAX reference check (matches the PyTorch module's semantics).
    ref = jnp.float32(0.0)
    for sf, tf in zip(student_features, teacher_features):
        ref = ref + jnp.mean((sf - tf) ** 2)
    assert jnp.allclose(loss, ref, rtol=1e-5, atol=1e-5), (loss, ref)

    print("KERNEL_OK")
</pallas_src>

<mosaic_0001>
module attributes {stable_mosaic.version = 11 : i64} {
  func.func @_ssd_partial_kernel(%arg0: i32, %arg1: memref<16x128xf32, #tpu.memory_space<vmem>>, %arg2: memref<16x128xf32, #tpu.memory_space<vmem>>, %arg3: memref<8x128xf32, #tpu.memory_space<vmem>>) attributes {dimension_semantics = [#tpu.dimension_semantics<parallel>], iteration_bounds = array<i64: 2>, scalar_prefetch = 0 : i64, scratch_operands = 0 : i64, tpu.core_type = #tpu.core_type<tc>, window_params = [{transform_indices = @transform_0, window_bounds = array<i64: 16, 128>}, {transform_indices = @transform_1, window_bounds = array<i64: 16, 128>}, {transform_indices = @transform_2, window_bounds = array<i64: 8, 128>}]} {
    %cst = arith.constant 0.000000e+00 : f32
    %0 = vector.broadcast %cst : f32 to vector<8x128xf32>
    %c0 = arith.constant 0 : index
    %c0_0 = arith.constant 0 : index
    %1 = vector.load %arg1[%c0, %c0_0] : memref<16x128xf32, #tpu.memory_space<vmem>>, vector<8x128xf32>
    %c0_1 = arith.constant 0 : index
    %c0_2 = arith.constant 0 : index
    %2 = vector.load %arg2[%c0_1, %c0_2] : memref<16x128xf32, #tpu.memory_space<vmem>>, vector<8x128xf32>
    %3 = arith.subf %1, %2 : vector<8x128xf32>
    %4 = arith.mulf %3, %3 : vector<8x128xf32>
    %5 = arith.addf %0, %4 : vector<8x128xf32>
    %c8 = arith.constant 8 : index
    %c0_3 = arith.constant 0 : index
    %6 = vector.load %arg1[%c8, %c0_3] : memref<16x128xf32, #tpu.memory_space<vmem>>, vector<8x128xf32>
    %c8_4 = arith.constant 8 : index
    %c0_5 = arith.constant 0 : index
    %7 = vector.load %arg2[%c8_4, %c0_5] : memref<16x128xf32, #tpu.memory_space<vmem>>, vector<8x128xf32>
    %8 = arith.subf %6, %7 : vector<8x128xf32>
    %9 = arith.mulf %8, %8 : vector<8x128xf32>
    %10 = arith.addf %5, %9 : vector<8x128xf32>
    %c0_6 = arith.constant 0 : index
    %c0_7 = arith.constant 0 : index
    %11 = vector.load %arg3[%c0_6, %c0_7] : memref<8x128xf32, #tpu.memory_space<vmem>>, vector<8x128xf32>
    tpu.vector_store %arg3[%c0_6, %c0_7], %10 {strides = array<i32>} : memref<8x128xf32, #tpu.memory_space<vmem>>, vector<8x128xf32>,
    return
  }
  func.func @transform_0(%arg0: i32) -> (i32, i32) {
    %c0_i32 = arith.constant 0 : i32
    %c0_i32_0 = arith.constant 0 : i32
    return %arg0, %c0_i32 : i32, i32
  }
  func.func @transform_1(%arg0: i32) -> (i32, i32) {
    %c0_i32 = arith.constant 0 : i32
    %c0_i32_0 = arith.constant 0 : i32
    return %arg0, %c0_i32 : i32, i32
  }
  func.func @transform_2(%arg0: i32) -> (i32, i32) {
    %c0_i32 = arith.constant 0 : i32
    %c0_i32_0 = arith.constant 0 : i32
    return %arg0, %c0_i32 : i32, i32
  }
}

</mosaic_0001>

<bundles_post_ra>
// kernel: tpu_custom_call.1
= control target key start
LH: loop header
LB: loop body
LE: loop exit
PB: predicated region body
PF: predicated region fallthrough
CT: control target
= control target key end

     0   :  { %7 = vsyncpa [#allocation3], 0  ;;  %s768_s0 = inlined_call_operand.hbm [shape: f32[32,128], index: 0, kind: input, shape index: {}]   ;;  %s769_s1 = inlined_call_operand.hbm [shape: f32[32,128], index: 1, kind: input, shape index: {}]   ;;  %s770_s2 = inlined_call_operand.hbm [shape: f32[16,128], index: 2, kind: output, shape index: {}]  }
   0x1   :  { %9 = vsyncpa [#allocation3 + $0x1], 0 }
   0x2   :  { %10 = vsyncpa [#allocation6], 0 }
   0x3   :  { %12 = vsyncpa [#allocation6 + $0x1], 0 }
   0x4   :  { %13 = vsyncpa [#allocation4], 0 }
   0x5   :  { %15 = vsyncpa [#allocation4 + $0x1], 0  ;;  %s546_s9 = smov 0   ;;  %s548_s10 = smov 0  }
   0x6   :  { %s550_s11 = smov 0   ;;  %s552_s12 = smov 0  }
   0x7 LB: > { %s567_s13 = sadd.s32 4294967295, %s524_s12   ;;  %s322_s14 = sadd.s32 4294967294, %s524_s12   ;;  %s524_s12 = sphi %s552_s12, %s786_s12   ;;  %s520_s11 = sphi %s550_s11, %s785_s11   ;;  %s516_s10 = sphi %s548_s10, %s784_s10   ;;  %s512_s9 = sphi %s546_s9, %s783_s9  }
   0x8   : > { %s571_s15 = sadd.s32 1, %s524_s12   ;;  %s28_s16 = sadd.s32 1, %s520_s11 }
   0x9   : > { %s25_s17 = ssub.s32 %s524_s12, %s571_s15  ;;  %p35_p0 = scmp.ne.s32.totalorder %s520_s11, %s516_s10 }
   0xa   : > { %p26_p1 = scmp.eq.s32.totalorder %s25_s17, 0  ;;  %p36_p2 = scmp.eq.s32.totalorder %s524_s12, 0 }
   0xb   : > { %p41_p3 = scmp.ne.s32.totalorder %s516_s10, %s512_s9  ;;  %p42_p4 = scmp.eq.s32.totalorder %s567_s13, 0 }
   0xc   : > { %s583_s18 = scalar_select %p26_p1, %s520_s11, %s28_s16  }
   0xd   : > { %p585_p5 = por %p36_p2, %p35_p0  ;;  %p589_p6 = por %p42_p4, %p41_p3 }
   0xe   : > { %p91_p7 = scmp.eq.s32.totalorder %s567_s13, 1  ;;  %p97_p8 = scmp.eq.s32.totalorder %s322_s14, 1 }
   0xf   : > { %s774_s20 = scalar_select %p589_p6, 1, 0 }
  0x10   : > { %p358_p10 = scmp.lt.s32.totalorder %s524_s12, 2  ;;  %p596_p11 = por %p91_p7, %p35_p0 }
  0x11   : > { %p600_p12 = por %p97_p8, %p41_p3  ;;  %s605_s23 = sand.u32 1, %s520_s11  }
  0x12   : > { %s775_s21 = scalar_select %p596_p11, 1, 0 }
  0x13   : > { %s776_s22 = scalar_select %p600_p12, 1, 0 }
  0x14   : > { %s339_s24 = sshll.u32 %s524_s12, 8  ;;  %s325_s25 = sshll.u32 %s605_s23, 4 }
  0x15   : > { %s614_s28 = scalar_lea.hbm %s768_s0, %s339_s24  ;;  %s121_s29 = scalar_lea.vmem [#allocation2], %s325_s25 }
  0x16   : > { %s128_s30 = sshll.u32 %s121_s29, 4  ;;  %p620_p13 = pnand %p358_p10, %p585_p5  ;;  %s624_s30 = int_to_ptr.vmem [resolvable:$true] %s128_s30 }
  0x17   : > { %s118_s4 = scalar_lea.sflag [#allocation3], %s605_s23  ;;  %s394_s5 = scalar_lea.hbm %s614_s28, 256 }
  0x18   : > { %p395_p0 = scmp.ne.s32.totalorder %s614_s28, %s394_s5  ;;  %p396_p1 = pneg %p620_p13 }
  0x19   : > { %s399_s8 = scalar_lea.hbm %s768_s0, 512  ;;  %p400_p4 = scmp.lt.u32.totalorder %s614_s28, %s768_s0 }
  0x1a   : > { %p397_p2 = pnand %p396_p1, %p395_p0  ;;  %p401_p5 = scmp.lt.u32.totalorder %s399_s8, %s394_s5 }
  0x1b   : > { %p403_p8 = scmp.lt.u32.totalorder %s394_s5, %s614_s28 }
  0x1c   : > { %p398_p3 = pneg %p397_p2  ;;  %p402_p7 = por %p401_p5, %p400_p4 }
  0x1e   : > { %p404_p10 = por %p403_p8, %p402_p7 }
  0x20   : > { %p405_p9 = pnand %p404_p10, %p398_p3 }
  0x22   : > { %408 = shalt.err (!%p405_p9)
}
  0x23   : > { %s409_s17 = scalar_lea.vmem %s624_s30, 256  ;;  %s526_s19 = smov [#allocation2]  }
  0x24   : > { %p410_p0 = scmp.ne.s32.totalorder %s624_s30, %s409_s17  ;;  %s414_s26 = sshll.u32 %s526_s19, 4  ;;  %s415_s26 = int_to_ptr.vmem [resolvable:$false] %s414_s26 }
  0x25   : > { %s416_s27 = scalar_lea.vmem %s415_s26, 512  ;;  %p417_p11 = scmp.lt.s32.totalorder %s624_s30, %s415_s26 }
  0x26   : > { %p412_p2 = pnand %p410_p0, %p396_p1  ;;  %p418_p4 = scmp.lt.s32.totalorder %s416_s27, %s409_s17 }
  0x28   : > { %p413_p12 = pneg %p412_p2  ;;  %p419_p5 = por %p418_p4, %p417_p11 }
  0x2a   : > { %p420_p7 = pnand %p419_p5, %p413_p12 }
  0x2c   : > { %423 = shalt.err (!%p420_p7)
}
  0x2d   : > { %s527_s29 = smov 128   ;;  %s528_s5 = smov 8  }
  0x2e   : > { %350 = dma.hbm_to_vmem [thread:$0]  (!%p620_p13), %s614_s28, 256, %s624_s30, %s118_s4, %s527_s29, %s527_s29, %s528_s5  }
  0x2f   : > { %p331_p9 = scmp.ge.s32.totalorder %s524_s12, 1  ;;  %p157_p11 = scmp.lt.s32.totalorder %s524_s12, 3 }
  0x30   : > { %s668_s14 = scalar_lea.hbm %s769_s1, %s339_s24  ;;  %s142_s16 = scalar_lea.vmem [#allocation5], %s325_s25 }
  0x31   : > { %p659_p12 = pnand %p331_p9, %p157_p11  ;;  %s149_s17 = sshll.u32 %s142_s16, 4  ;;  %s672_s17 = int_to_ptr.vmem [resolvable:$true] %s149_s17 }
  0x32   : > { %s139_s28 = scalar_lea.sflag [#allocation6], %s605_s23  ;;  %s424_s30 = scalar_lea.hbm %s668_s14, 256 }
  0x33   : > { %p425_p3 = scmp.ne.s32.totalorder %s668_s14, %s424_s30  ;;  %s429_s24 = scalar_lea.hbm %s769_s1, 512 }
  0x34   : > { %p430_p0 = scmp.lt.u32.totalorder %s668_s14, %s769_s1  ;;  %p431_p2 = scmp.lt.u32.totalorder %s429_s24, %s424_s30 }
  0x35   : > { %p427_p8 = pnand %p425_p3, %p396_p1  ;;  %p433_p5 = scmp.lt.u32.totalorder %s424_s30, %s668_s14 }
  0x36   : > { %p432_p4 = por %p431_p2, %p430_p0 }
  0x37   : > { %p428_p10 = pneg %p427_p8 }
  0x38   : > { %p434_p7 = por %p433_p5, %p432_p4 }
  0x3a   : > { %p435_p9 = pnand %p434_p7, %p428_p10 }
  0x3c   : > { %438 = shalt.err (!%p435_p9)
}
  0x3d   : > { %s439_s25 = scalar_lea.vmem %s672_s17, 256  ;;  %s529_s7 = smov [#allocation5]  }
  0x3e   : > { %p440_p11 = scmp.ne.s32.totalorder %s672_s17, %s439_s25  ;;  %s444_s8 = sshll.u32 %s529_s7, 4  ;;  %s445_s8 = int_to_ptr.vmem [resolvable:$false] %s444_s8 }
  0x3f   : > { %s446_s16 = scalar_lea.vmem %s445_s8, 512  ;;  %p447_p6 = scmp.lt.s32.totalorder %s672_s17, %s445_s8 }
  0x40   : > { %p442_p3 = pnand %p440_p11, %p396_p1  ;;  %p448_p0 = scmp.lt.s32.totalorder %s446_s16, %s439_s25 }
  0x42   : > { %p443_p8 = pneg %p442_p3  ;;  %p449_p2 = por %p448_p0, %p447_p6 }
  0x44   : > { %p450_p4 = pnand %p449_p2, %p443_p8 }
  0x46   : > { %453 = shalt.err (!%p450_p4)
}
  0x47   : > { %353 = dma.hbm_to_vmem [thread:$0]  (!%p620_p13), %s668_s14, 256, %s672_s17, %s139_s28, %s527_s29, %s527_s29, %s528_s5  }
  0x48   : > { %161 = sbr.rel (%p659_p12) target bundleno = 108 (0x6c), region = 28  ;;  %s706_s30 = sand.u32 (!%p659_p12), 1, %s516_s10  }
  0x49   : > { %s332_s4 = sshll.u32 (!%p659_p12), %s706_s30, 4  ;;  %s164_s19 = scalar_lea.sflag (!%p659_p12), [#allocation3], %s706_s30 }
  0x4a   : > { %s167_s3 = scalar_lea.vmem (!%p659_p12), [#allocation2], %s332_s4  ;;  %p779_p6 = scmp.ne.s32.totalorder (!%p659_p12), %s774_s20, 0 }
  0x4f   : > { %499 = dma.done.wait (%p779_p6), %s164_s19, 256  }
  0x50   : > { %501 = vsyncadd (%p779_p6), %s164_s19, 4294967040  ;;  %s173_s23 = scalar_lea.sflag [#allocation6], %s706_s30  ;;  %s176_s29 = scalar_lea.vmem [#allocation5], %s332_s4 }
  0x51   : > { %503 = dma.done.wait (%p779_p6), %s173_s23, 256  }
  0x52   : > { %505 = vsyncadd (%p779_p6), %s173_s23, 4294967040  ;;  %s334_s5 = sshll.u32 %s706_s30, 3  ;;  %v204_v0 = vld [vmem:[%s167_s3] sm:$0xff]  ;;  %v209_v2 = vld [vmem:[%s167_s3 + $0x8] sm:$0xff]  ;;  %s336_s17 = sshll.u32 %s567_s13, 7 }
  0x53   : > { %v205_v1 = vld [vmem:[%s176_s29] sm:$0xff]  ;;  %v210_v4 = vld [vmem:[%s176_s29 + $0x8] sm:$0xff]  ;;  %s201_s6 = scalar_lea.vmem [#allocation7], %s334_s5  ;;  %s726_s24 = scalar_lea.hbm %s770_s2, %s336_s17 }
  0x54   : > { %v206_v3 = vsub.f32 %v204_v0, %v205_v1  ;;  %v211_v5 = vsub.f32 %v209_v2, %v210_v4  ;;  %s229_s14 = sshll.u32 %s201_s6, 4  ;;  %s216_s26 = scalar_lea.sflag [#allocation4], %s706_s30  ;;  %s721_s14 = int_to_ptr.vmem [resolvable:$true] %s229_s14 }
  0x55   : > { %s454_s27 = scalar_lea.vmem %s721_s14, 128  ;;  %p780_p1 = scmp.ne.s32.totalorder %s775_s21, 0 }
  0x56   : > { %v207_v6 = vmul.f32 %v206_v3, %v206_v3  ;;  %v212_v7 = vmul.f32 %v211_v5, %v211_v5  ;;  %p455_p13 = scmp.ne.s32.totalorder %s721_s14, %s454_s27  ;;  %s530_s13 = smov [#allocation7]  }
  0x57   : > { %s458_s25 = sshll.u32 %s530_s13, 4  ;;  %s459_s25 = int_to_ptr.vmem [resolvable:$false] %s458_s25 }
  0x58   : > { %v213_v8 = vadd.f32 %v212_v7, %v207_v6  ;;  %p456_p12 = pnand %p455_p13, %p780_p1  ;;  %s460_s7 = scalar_lea.vmem %s459_s25, 256 }
  0x59   : > { %p461_p5 = scmp.lt.s32.totalorder %s721_s14, %s459_s25  ;;  %p462_p7 = scmp.lt.s32.totalorder %s460_s7, %s454_s27 }
  0x5a   : > { %214 = vst [vmem:[%s201_s6] sm:$0xff] %v213_v8  ;;  %p457_p10 = pneg %p456_p12 }
  0x5b   : > { %p463_p9 = por %p462_p7, %p461_p5 }
  0x5d   : > { %p464_p11 = pnand %p463_p9, %p457_p10 }
  0x5f   : > { %467 = shalt.err (!%p464_p11)
}
  0x60   : > { %s468_s8 = scalar_lea.hbm %s726_s24, 128  ;;  %s472_s4 = scalar_lea.hbm %s770_s2, 256 }
  0x61   : > { %p469_p3 = scmp.ne.s32.totalorder %s726_s24, %s468_s8  ;;  %p473_p2 = scmp.lt.u32.totalorder %s726_s24, %s770_s2 }
  0x62   : > { %p474_p4 = scmp.lt.u32.totalorder %s472_s4, %s468_s8  ;;  %p476_p13 = scmp.lt.u32.totalorder %s468_s8, %s726_s24 }
  0x63   : > { %p470_p8 = pnand %p469_p3, %p780_p1 }
  0x64   : > { %p475_p6 = por %p474_p4, %p473_p2 }
  0x65   : > { %p471_p0 = pneg %p470_p8 }
  0x66   : > { %p477_p12 = por %p476_p13, %p475_p6 }
  0x68   : > { %p478_p10 = pnand %p477_p12, %p471_p0 }
  0x6a   : > { %481 = shalt.err (!%p478_p10)
}
  0x6b   : > { %345 = dma.vmem_to_hbm [thread:$0]  (%p780_p1), %s721_s14, 128, %s726_s24, %s216_s26  }
  0x6c PF: > { %s241_s23 = sand.u32 1, %s512_s9   ;;  %p781_p5 = scmp.ne.s32.totalorder %s776_s22, 0 }
  0x6d   : > { %p782_p7 = scmp.ge.s32.totalorder %s524_s12, 2  ;;  %s242_s29 = scalar_lea.sflag [#allocation4], %s241_s23 }
  0x6f   : > { %p355_p9 = pnand %p782_p7, %p781_p5 }
  0x71   : > { %507 = dma.done.wait (!%p355_p9), %s242_s29, 128  }
  0x72   : > { %509 = vsyncadd (!%p355_p9), %s242_s29, 4294967168  ;;  %p18_p11 = scmp.ge.s32.totalorder %s571_s15, 4   ;;  %s783_s9 = smov %s516_s10 }
  0x73   : > { %s784_s10 = smov %s520_s11  ;;  %s785_s11 = smov %s583_s18 }
  0x74   : > { %s786_s12 = smov %s571_s15  ;;  %20 = sbr.rel (!%p18_p11) target bundleno = 7 (0x7), region = 86 }
  0x7b   :  { %247 = vsyncpa [#allocation3], 1 }
  0x7c   :  { %249 = vsyncpa [#allocation3 + $0x1], 1 }
  0x7d   :  { %250 = vsyncpa [#allocation6], 1 }
  0x7e   :  { %252 = vsyncpa [#allocation6 + $0x1], 1 }
  0x7f   :  { %253 = vsyncpa [#allocation4], 1 }
  0x80   :  { %255 = vsyncpa [#allocation4 + $0x1], 1 }

</bundles_post_ra>
